<compile_context>
chip_gen: v6e
topology: v6e:2x2x1
jax: 0.10.0
libtpu: 0.0.40
codegen_flags: <defaults>
</compile_context>

<pallas_src>
import functools
import itertools

import jax
import jax.numpy as jnp
import numpy as np
from jax import lax
from jax.experimental import pallas as pl
from jax.experimental.pallas import tpu as pltpu

try:  # exact Hungarian on the host (matches the torch reference)
    from scipy.optimize import linear_sum_assignment as _scipy_lsa
except Exception:  # pragma: no cover
    _scipy_lsa = None

COST_CLASS = 1.0
COST_BBOX = 1.0
_NEG_INF = -1e9  # logit fill for padded class columns (exp underflows to 0)


def _round_up(x, m):
    return ((x + m - 1) // m) * m


# --------------------------------------------------------------------------- #
# Pallas kernel: one (batch, query-tile) block of the cost matrix.
# --------------------------------------------------------------------------- #
def _cost_block_kernel(logits_ref, boxes_ref, tgt_ids_ref, tgt_bbox_t_ref, c_ref,
                       *, cost_class_w, cost_bbox_w):
    # logits_ref     : [TQ, Cp]  f32   (padded class cols filled with -1e9)
    # boxes_ref      : [TQ, 4]   f32
    # tgt_ids_ref    : [1,  Tp]  int32 (padding columns = -1)
    # tgt_bbox_t_ref : [4,  Tp]  f32   (padding columns = 0)
    # c_ref          : [TQ, Tp]  f32
    logits = logits_ref[...]
    m = jnp.max(logits, axis=-1, keepdims=True)
    e = jnp.exp(logits - m)                                      # f32 on EUP
    inv_denom = pl.reciprocal(jnp.sum(e, axis=-1, keepdims=True),
                              approx=True)                       # [TQ, 1]

    tgt_ids = tgt_ids_ref[...]                                   # [1, Tp]
    cpad = logits.shape[-1]
    tpad = tgt_ids.shape[-1]
    # one_hot(tgt_ids, C).T built in-kernel (no HBM traffic for it); exact in bf16.
    onehot = (lax.broadcasted_iota(jnp.int32, (cpad, tpad), 0)
              == tgt_ids).astype(jnp.bfloat16)                   # [Cp, Tp]

    # cost_class = -softmax(logits)[:, tgt_ids]
    #            = -(e @ onehot) * (1 / sum(e))   (normalization folded post-matmul)
    gathered = jnp.dot(e.astype(jnp.bfloat16), onehot,
                       preferred_element_type=jnp.float32)       # [TQ, Tp] (MXU)
    cost_class = -(gathered * inv_denom)

    # cost_bbox = L1 cdist(boxes, tgt_bbox); 4-coordinate unrolled VPU filler.
    boxes = boxes_ref[...]                                        # [TQ, 4]
    tgt_t = tgt_bbox_t_ref[...]                                   # [4, Tp]
    cost_bbox = jnp.zeros_like(cost_class)
    for d in range(boxes.shape[-1]):
        cost_bbox = cost_bbox + jnp.abs(boxes[:, d:d + 1] - tgt_t[d:d + 1, :])

    c_ref[...] = cost_bbox_w * cost_bbox + cost_class_w * cost_class


# --------------------------------------------------------------------------- #
# Wrapper: per-batch (block-diagonal) cost matrix.
# --------------------------------------------------------------------------- #
def matcher_cost_matrix(pred_logits, pred_boxes, tgt_ids_b, tgt_bbox_b,
                        cost_class_w=COST_CLASS, cost_bbox_w=COST_BBOX):
    """Per-batch DETR matching cost.

    pred_logits : [bs, nq, C]
    pred_boxes  : [bs, nq, 4]
    tgt_ids_b   : [bs, T_pad]     int32, -1 marks padding columns
    tgt_bbox_b  : [bs, T_pad, 4]  f32, zero-padded
    returns C   : [bs, nq, T_pad] f32 (padding columns hold junk cost)
    """
    bs, nq, nc = pred_logits.shape
    t_pad = int(tgt_ids_b.shape[1])

    tile_q = min(512, _round_up(nq, 8))
    nq_pad = _round_up(nq, tile_q)
    # Lane-dense padding of the class axis only when it is large enough to pay off.
    c_pad = _round_up(nc, 128) if nc >= 64 else nc

    logits = pred_logits.astype(jnp.float32)
    boxes = pred_boxes.astype(jnp.float32)
    if c_pad != nc:
        logits = jnp.pad(logits, ((0, 0), (0, 0), (0, c_pad - nc)),
                         constant_values=_NEG_INF)
    if nq_pad != nq:
        logits = jnp.pad(logits, ((0, 0), (0, nq_pad - nq), (0, 0)))
        boxes = jnp.pad(boxes, ((0, 0), (0, nq_pad - nq), (0, 0)))

    tgt_ids3 = tgt_ids_b.astype(jnp.int32)[:, None, :]                      # [bs,1,Tp]
    tgt_bbox_t = jnp.transpose(tgt_bbox_b.astype(jnp.float32), (0, 2, 1))   # [bs,4,Tp]

    grid = (bs, nq_pad // tile_q)

    # VMEM budget: double-buffered IO blocks + in-kernel temporaries, with headroom.
    io_bytes = 4 * (tile_q * c_pad + tile_q * 4 + t_pad + 4 * t_pad + tile_q * t_pad)
    tmp_bytes = 4 * (2 * tile_q * c_pad + 4 * tile_q * t_pad) + 2 * c_pad * t_pad
    vmem_limit = int(min(max(4 * io_bytes + 2 * tmp_bytes, 2 << 20), 48 << 20))

    cost_est = pl.CostEstimate(
        flops=int(2 * bs * nq_pad * c_pad * t_pad + 12 * bs * nq_pad * t_pad),
        transcendentals=int(bs * nq_pad * c_pad),
        bytes_accessed=int(4 * (bs * nq_pad * c_pad + bs * nq_pad * 4
                                + bs * t_pad + bs * 4 * t_pad
                                + bs * nq_pad * t_pad)),
    )

    kernel = functools.partial(_cost_block_kernel,
                               cost_class_w=float(cost_class_w),
                               cost_bbox_w=float(cost_bbox_w))

    out = pl.pallas_call(
        kernel,
        grid=grid,
        in_specs=[
            pl.BlockSpec((None, tile_q, c_pad), lambda b, i: (b, i, 0)),
            pl.BlockSpec((None, tile_q, 4), lambda b, i: (b, i, 0)),
            pl.BlockSpec((None, 1, t_pad), lambda b, i: (b, 0, 0)),
            pl.BlockSpec((None, 4, t_pad), lambda b, i: (b, 0, 0)),
        ],
        out_specs=pl.BlockSpec((None, tile_q, t_pad), lambda b, i: (b, i, 0)),
        out_shape=jax.ShapeDtypeStruct((bs, nq_pad, t_pad), jnp.float32),
        compiler_params=pltpu.CompilerParams(
            dimension_semantics=("parallel", "parallel"),
            vmem_limit_bytes=vmem_limit),
        cost_estimate=cost_est,
    )(logits, boxes, tgt_ids3, tgt_bbox_t)

    return out[:, :nq, :]


# --------------------------------------------------------------------------- #
# Host-side glue (padding, Hungarian assignment, forward).
# --------------------------------------------------------------------------- #
def _pad_targets(targets, bs):
    """Pad per-batch targets to a common T_pad (lane-dense when T is large)."""
    sizes = [int(np.asarray(t["labels"]).shape[0]) for t in targets]
    t_max = max(sizes) if sizes else 0
    t_pad = _round_up(t_max, 128) if t_max >= 64 else max(t_max, 1)
    ids = np.full((bs, t_pad), -1, np.int32)
    boxes = np.zeros((bs, t_pad, 4), np.float32)
    for b, t in enumerate(targets):
        n = sizes[b]
        if n:
            ids[b, :n] = np.asarray(t["labels"], np.int32)
            boxes[b, :n] = np.asarray(t["control_points"], np.float32)
    return jnp.asarray(ids), jnp.asarray(boxes), t_pad


def _linear_sum_assignment(cost):
    # TODO(synk): the Hungarian assignment is sequential/combinatorial with no clean
    # Pallas equivalent; it runs host-side (scipy when available).
    cost = np.asarray(cost, np.float64)
    if _scipy_lsa is not None:
        r, c = _scipy_lsa(cost)
        return np.asarray(r, np.int64), np.asarray(c, np.int64)
    # Brute-force fallback (exact; only viable for tiny matrices, nr >= ncol).
    nr, ncol = cost.shape
    best, best_cost = None, np.inf
    for rows in itertools.permutations(range(nr), ncol):
        v = cost[list(rows), range(ncol)].sum() if ncol else 0.0
        if v < best_cost:
            best_cost, best = v, rows
    rows = np.asarray(best, np.int64)
    cols = np.arange(ncol, dtype=np.int64)
    order = np.argsort(rows)
    return rows[order], cols[order]


def hungarian_matcher_forward(outputs, targets):
    """Default branch of HungarianMatcher.forward (do_polygons=False).

    Cost matrices (per-batch block-diagonal only) are computed on-TPU with Pallas;
    the assignment itself runs on the host.
    """
    pred_logits = outputs["pred_logits"]
    pred_boxes = outputs["pred_boxes"]
    bs, nq = pred_logits.shape[:2]
    sizes = [int(t["control_points"].shape[0]) for t in targets]

    if max(sizes, default=0) == 0:  # zero-target guard: never call a 0-width kernel
        empty = np.zeros((0,), np.int64)
        return [(empty.copy(), empty.copy()) for _ in range(bs)], None

    tgt_ids_b, tgt_bbox_b, _ = _pad_targets(targets, bs)
    C = matcher_cost_matrix(pred_logits, pred_boxes, tgt_ids_b, tgt_bbox_b)
    C = np.asarray(jax.block_until_ready(C))  # [bs, nq, T_pad]

    static_indices = []
    for b, sz in enumerate(sizes):
        if sz == 0:
            e = np.zeros((0,), np.int64)
            static_indices.append((e, e))
            continue
        static_indices.append(_linear_sum_assignment(C[b, :, :sz]))
    # TODO(synk): polyline / pinet / val / min_max / gt_train / do_polygons=True
    # branches are host control flow + scipy LSA; not translated to Pallas.
    return static_indices, None


# --------------------------------------------------------------------------- #
if __name__ == "__main__":
    key = jax.random.PRNGKey(0)
    bs, num_queries, num_classes = 2, 8, 4
    k1, k2, k3, k4, k5, k6 = jax.random.split(key, 6)

    outputs = {
        "pred_logits": jax.random.normal(k1, (bs, num_queries, num_classes), jnp.float32),
        "pred_boxes": jax.random.uniform(k2, (bs, num_queries, 4), jnp.float32),
    }
    targets = [
        {"labels": jax.random.randint(k3, (3,), 0, num_classes),
         "control_points": jax.random.uniform(k4, (3, 4), jnp.float32)},
        {"labels": jax.random.randint(k5, (2,), 0, num_classes),
         "control_points": jax.random.uniform(k6, (2, 4), jnp.float32)},
    ]
    sizes = [int(t["control_points"].shape[0]) for t in targets]

    # Run the Pallas cost-matrix kernel and verify against a pure host reference
    # (tolerance relaxed for bf16 MXU inputs + approx reciprocal).
    tgt_ids_b, tgt_bbox_b, _ = _pad_targets(targets, bs)
    C_kernel = np.asarray(jax.block_until_ready(
        matcher_cost_matrix(outputs["pred_logits"], outputs["pred_boxes"],
                            tgt_ids_b, tgt_bbox_b)))

    for b in range(bs):
        prob = np.asarray(jax.nn.softmax(outputs["pred_logits"][b], axis=-1))
        ids = np.asarray(targets[b]["labels"])
        cps = np.asarray(targets[b]["control_points"], np.float32)
        bxs = np.asarray(outputs["pred_boxes"][b], np.float32)
        cost_class_ref = -prob[:, ids]
        cost_bbox_ref = np.abs(bxs[:, None, :] - cps[None, :, :]).sum(-1)
        C_ref = COST_BBOX * cost_bbox_ref + COST_CLASS * cost_class_ref
        np.testing.assert_allclose(C_kernel[b, :, :sizes[b]], C_ref,
                                   rtol=2e-2, atol=2e-2)

    # Full forward (cost matrices on TPU, Hungarian assignment on host).
    static_indices, poly_ret = hungarian_matcher_forward(outputs, targets)
    assert poly_ret is None
    for (i, j), t in zip(static_indices, targets):
        assert len(i) == len(j) == min(num_queries, t["control_points"].shape[0])

    print("KERNEL_OK")
</pallas_src>

<mosaic_0001>
module attributes {stable_mosaic.version = 11 : i64} {
  func.func @_cost_block_kernel(%arg0: i32, %arg1: i32, %arg2: memref<1x8x4xf32, #tpu.memory_space<vmem>>, %arg3: memref<1x8x4xf32, #tpu.memory_space<vmem>>, %arg4: memref<1x1x3xi32, #tpu.memory_space<vmem>>, %arg5: memref<1x4x3xf32, #tpu.memory_space<vmem>>, %arg6: memref<1x8x3xf32, #tpu.memory_space<vmem>>) attributes {dimension_semantics = [#tpu.dimension_semantics<parallel>, #tpu.dimension_semantics<parallel>], iteration_bounds = array<i64: 2, 1>, scalar_prefetch = 0 : i64, scratch_operands = 0 : i64, tpu.core_type = #tpu.core_type<tc>, window_params = [{transform_indices = @transform_0, window_bounds = array<i64: 1, 8, 4>}, {transform_indices = @transform_1, window_bounds = array<i64: 1, 8, 4>}, {transform_indices = @transform_2, window_bounds = array<i64: 1, 1, 3>}, {transform_indices = @transform_3, window_bounds = array<i64: 1, 4, 3>}, {transform_indices = @transform_4, window_bounds = array<i64: 1, 8, 3>}]} {
    %c0 = arith.constant 0 : index
    %c0_0 = arith.constant 0 : index
    %c0_1 = arith.constant 0 : index
    %0 = vector.load %arg2[%c0, %c0_0, %c0_1] : memref<1x8x4xf32, #tpu.memory_space<vmem>>, vector<1x8x4xf32>
    %1 = vector.shape_cast %0 : vector<1x8x4xf32> to vector<8x4xf32>
    %cst = arith.constant dense<0xFF800000> : vector<8xf32>
    %2 = vector.multi_reduction <maximumf>, %1, %cst [1] : vector<8x4xf32> to vector<8xf32>
    %3 = vector.shape_cast %2 : vector<8xf32> to vector<8x1xf32>
    %4 = vector.broadcast %3 : vector<8x1xf32> to vector<8x4xf32>
    %5 = arith.subf %1, %4 : vector<8x4xf32>
    %6 = math.exp %5 : vector<8x4xf32>
    %cst_2 = arith.constant dense<0.000000e+00> : vector<8xf32>
    %7 = vector.multi_reduction <add>, %6, %cst_2 [1] : vector<8x4xf32> to vector<8xf32>
    %8 = vector.shape_cast %7 : vector<8xf32> to vector<8x1xf32>
    %9 = tpu.reciprocal %8 {approx = true} : vector<8x1xf32> -> vector<8x1xf32>
    %c0_3 = arith.constant 0 : index
    %c0_4 = arith.constant 0 : index
    %c0_5 = arith.constant 0 : index
    %10 = vector.load %arg4[%c0_3, %c0_4, %c0_5] : memref<1x1x3xi32, #tpu.memory_space<vmem>>, vector<1x1x3xi32>
    %11 = vector.shape_cast %10 : vector<1x1x3xi32> to vector<1x3xi32>
    %12 = tpu.iota {dimensions = array<i32: 0>} : vector<4x3xi32>
    %13 = vector.broadcast %11 : vector<1x3xi32> to vector<4x3xi32>
    %14 = arith.cmpi eq, %12, %13 : vector<4x3xi32>
    %15 = arith.extui %14 : vector<4x3xi1> to vector<4x3xi32>
    %16 = arith.sitofp %15 : vector<4x3xi32> to vector<4x3xf32>
    %17 = arith.truncf %16 : vector<4x3xf32> to vector<4x3xbf16>
    %18 = arith.truncf %6 : vector<8x4xf32> to vector<8x4xbf16>
    %cst_6 = arith.constant dense<0.000000e+00> : vector<8x3xf32>
    %19 = tpu.matmul %18, %17, %cst_6 {dimension_numbers = #tpu.dot_dimension_numbers<[1], [0], [0], [1], [0, 0, 1, 1], [], []>} : vector<8x4xbf16>, vector<4x3xbf16>, vector<8x3xf32> -> vector<8x3xf32>
    %20 = vector.broadcast %9 : vector<8x1xf32> to vector<8x3xf32>
    %21 = arith.mulf %19, %20 : vector<8x3xf32>
    %cst_7 = arith.constant 0.000000e+00 : f32
    %22 = vector.broadcast %cst_7 : f32 to vector<8x3xf32>
    %23 = arith.subf %22, %21 : vector<8x3xf32>
    %c0_8 = arith.constant 0 : index
    %c0_9 = arith.constant 0 : index
    %c0_10 = arith.constant 0 : index
    %24 = vector.load %arg3[%c0_8, %c0_9, %c0_10] : memref<1x8x4xf32, #tpu.memory_space<vmem>>, vector<1x8x4xf32>
    %25 = vector.shape_cast %24 : vector<1x8x4xf32> to vector<8x4xf32>
    %c0_11 = arith.constant 0 : index
    %c0_12 = arith.constant 0 : index
    %c0_13 = arith.constant 0 : index
    %26 = vector.load %arg5[%c0_11, %c0_12, %c0_13] : memref<1x4x3xf32, #tpu.memory_space<vmem>>, vector<1x4x3xf32>
    %27 = vector.shape_cast %26 : vector<1x4x3xf32> to vector<4x3xf32>
    %cst_14 = arith.constant 0.000000e+00 : f32
    %28 = vector.broadcast %cst_14 : f32 to vector<8x3xf32>
    %29 = vector.extract_strided_slice %25 {offsets = [0, 0], sizes = [8, 1], strides = [1, 1]} : vector<8x4xf32> to vector<8x1xf32>
    %30 = vector.extract_strided_slice %27 {offsets = [0, 0], sizes = [1, 3], strides = [1, 1]} : vector<4x3xf32> to vector<1x3xf32>
    %31 = vector.broadcast %29 : vector<8x1xf32> to vector<8x3xf32>
    %32 = vector.broadcast %30 : vector<1x3xf32> to vector<8x3xf32>
    %33 = arith.subf %31, %32 : vector<8x3xf32>
    %34 = math.absf %33 : vector<8x3xf32>
    %35 = arith.addf %28, %34 : vector<8x3xf32>
    %36 = vector.extract_strided_slice %25 {offsets = [0, 1], sizes = [8, 1], strides = [1, 1]} : vector<8x4xf32> to vector<8x1xf32>
    %37 = vector.extract_strided_slice %27 {offsets = [1, 0], sizes = [1, 3], strides = [1, 1]} : vector<4x3xf32> to vector<1x3xf32>
    %38 = vector.broadcast %36 : vector<8x1xf32> to vector<8x3xf32>
    %39 = vector.broadcast %37 : vector<1x3xf32> to vector<8x3xf32>
    %40 = arith.subf %38, %39 : vector<8x3xf32>
    %41 = math.absf %40 : vector<8x3xf32>
    %42 = arith.addf %35, %41 : vector<8x3xf32>
    %43 = vector.extract_strided_slice %25 {offsets = [0, 2], sizes = [8, 1], strides = [1, 1]} : vector<8x4xf32> to vector<8x1xf32>
    %44 = vector.extract_strided_slice %27 {offsets = [2, 0], sizes = [1, 3], strides = [1, 1]} : vector<4x3xf32> to vector<1x3xf32>
    %45 = vector.broadcast %43 : vector<8x1xf32> to vector<8x3xf32>
    %46 = vector.broadcast %44 : vector<1x3xf32> to vector<8x3xf32>
    %47 = arith.subf %45, %46 : vector<8x3xf32>
    %48 = math.absf %47 : vector<8x3xf32>
    %49 = arith.addf %42, %48 : vector<8x3xf32>
    %50 = vector.extract_strided_slice %25 {offsets = [0, 3], sizes = [8, 1], strides = [1, 1]} : vector<8x4xf32> to vector<8x1xf32>
    %51 = vector.extract_strided_slice %27 {offsets = [3, 0], sizes = [1, 3], strides = [1, 1]} : vector<4x3xf32> to vector<1x3xf32>
    %52 = vector.broadcast %50 : vector<8x1xf32> to vector<8x3xf32>
    %53 = vector.broadcast %51 : vector<1x3xf32> to vector<8x3xf32>
    %54 = arith.subf %52, %53 : vector<8x3xf32>
    %55 = math.absf %54 : vector<8x3xf32>
    %56 = arith.addf %49, %55 : vector<8x3xf32>
    %cst_15 = arith.constant 1.000000e+00 : f32
    %57 = vector.broadcast %cst_15 : f32 to vector<8x3xf32>
    %58 = arith.mulf %57, %56 : vector<8x3xf32>
    %cst_16 = arith.constant 1.000000e+00 : f32
    %59 = vector.broadcast %cst_16 : f32 to vector<8x3xf32>
    %60 = arith.mulf %59, %23 : vector<8x3xf32>
    %61 = arith.addf %58, %60 : vector<8x3xf32>
    %c0_17 = arith.constant 0 : index
    %c0_18 = arith.constant 0 : index
    %c0_19 = arith.constant 0 : index
    %62 = vector.load %arg6[%c0_17, %c0_18, %c0_19] : memref<1x8x3xf32, #tpu.memory_space<vmem>>, vector<1x8x3xf32>
    %63 = vector.shape_cast %62 : vector<1x8x3xf32> to vector<8x3xf32>
    %64 = vector.shape_cast %61 : vector<8x3xf32> to vector<1x8x3xf32>
    tpu.vector_store %arg6[%c0_17, %c0_18, %c0_19], %64 {strides = array<i32>} : memref<1x8x3xf32, #tpu.memory_space<vmem>>, vector<1x8x3xf32>,
    return
  }
  func.func @transform_0(%arg0: i32, %arg1: i32) -> (i32, i32, i32) {
    %c0_i32 = arith.constant 0 : i32
    %c0_i32_0 = arith.constant 0 : i32
    return %arg0, %arg1, %c0_i32 : i32, i32, i32
  }
  func.func @transform_1(%arg0: i32, %arg1: i32) -> (i32, i32, i32) {
    %c0_i32 = arith.constant 0 : i32
    %c0_i32_0 = arith.constant 0 : i32
    return %arg0, %arg1, %c0_i32 : i32, i32, i32
  }
  func.func @transform_2(%arg0: i32, %arg1: i32) -> (i32, i32, i32) {
    %c0_i32 = arith.constant 0 : i32
    %c0_i32_0 = arith.constant 0 : i32
    %c0_i32_1 = arith.constant 0 : i32
    return %arg0, %c0_i32, %c0_i32_0 : i32, i32, i32
  }
  func.func @transform_3(%arg0: i32, %arg1: i32) -> (i32, i32, i32) {
    %c0_i32 = arith.constant 0 : i32
    %c0_i32_0 = arith.constant 0 : i32
    %c0_i32_1 = arith.constant 0 : i32
    return %arg0, %c0_i32, %c0_i32_0 : i32, i32, i32
  }
  func.func @transform_4(%arg0: i32, %arg1: i32) -> (i32, i32, i32) {
    %c0_i32 = arith.constant 0 : i32
    %c0_i32_0 = arith.constant 0 : i32
    return %arg0, %arg1, %c0_i32 : i32, i32, i32
  }
}

</mosaic_0001>

<bundles_post_ra>
// kernel: tpu_custom_call.1
= control target key start
LH: loop header
LB: loop body
LE: loop exit
PB: predicated region body
PF: predicated region fallthrough
CT: control target
= control target key end

     0   :  { %s633_s15 = smov 0   ;;  %s635_s16 = smov 0   ;;  %s688_s0 = inlined_call_operand.vmem [shape: f32[2,8,4], index: 0, kind: input, shape index: {}]   ;;  %s689_s1 = inlined_call_operand.vmem [shape: f32[2,8,4], index: 1, kind: input, shape index: {}]   ;;  %s690_s2 = inlined_call_operand.vmem [shape: s32[2,1,3], index: 2, kind: input, shape index: {}]   ;;  %s691_s3 = inlined_call_operand.vmem [shape: f32[2,4,3], index: 3, kind: input, shape index: {}]   ;;  %s692_s4 = inlined_call_operand.vmem [shape: f32[2,8,3], index: 4, kind: output, shape index: {}]  }
   0x1   :  { %s637_s17 = smov 0  }
   0x2 LB: > { %s26_s18 = sadd.s32 1, %s596_s16  ;;  %p521_p0 = scmp.ge.s32.totalorder %s600_s17, 1  ;;  %s600_s17 = sphi %s637_s17, %s14_s17   ;;  %s596_s16 = sphi %s635_s16, %s694_s16   ;;  %s592_s15 = sphi %s633_s15, %s693_s15  }
   0x3   : > { %p28_p1 = scmp.ge.s32.totalorder %s26_s18, 2  ;;  %p211_p2 = scmp.lt.s32.totalorder %s600_s17, 3 }
   0x5   : > { %s696_s18 = smov (%p28_p1, %s26_s18), 0  ;;  %p212_p3 = pnand %p521_p0, %p211_p2 }
   0x6   : > { %p255_p4 = scmp.lt.s32.totalorder (!%p212_p3), %s592_s15, 1 }
   0x7   : > { %215 = sbr.rel (%p212_p3) target bundleno = 375 (0x177), region = 36 }
   0xc   : > { %s698_s15 = smov (!%p255_p4, %s592_s15), 1  ;;  %vm285_vm0 = vcmask 31744   ;;  %v297_v2 = vlaneseq  ;;  %v602_v3 = vmov 0.0   ;;  %vm603_vm1 = vmmov 0  }
   0xd   : > { %s654_s19 = sshll.u32 %s698_s15, 3  ;;  %s271_s25 = scalar_lea.vmem %s690_s2, %s698_s15  ;;  %533 = vmatprep.subr.bf16.mxu0 %v602_v3  ;;  %535 = vmatprep.mubr.msk.bf16.mxu0 %vm603_vm1, %v602_v3  ;;  %vm311_vm3 = vcmask 1041408   ;;  %v604_v9 = vmov 0   ;;  %v605_v11 = vmov 2   ;;  %v606_v12 = vmov 1  }
   0xe   : > { %s261_s22 = scalar_lea.vmem %s688_s0, %s654_s19  ;;  %v526_v4 = vld [vmem:[%s271_s25] ss:$0 sm:$0xff]  ;;  %v298_v5 = vshrl.u32 %v297_v2, 7  ;;  %s268_s28 = scalar_lea.vmem %s689_s1, %s654_s19  ;;  %569 = vset.pattern.permute.xlu1 %v604_v9  ;;  %571 = vset.pattern.permute.xlu0 %v605_v11  ;;  %v607_v13 = vmov 3   ;;  %vm405_vm4 = vcmask 23552  }
   0xf   : > { %v284_v0 = vld [vmem:[%s261_s22] sm:$0xff]  ;;  %s524_s29 = sshll.u32 %s698_s15, 2  ;;  %s282_s9 = scalar_lea.vmem %s692_s4, %s654_s19 }
  0x10   : > { %v286_v1 = vsel %vm285_vm0, %v284_v0, -inf  ;;  %vm303_vm2 = vcmp.eq.s32.totalorder %v298_v5, %v526_v4  ;;  %v357_v10 = vld [vmem:[%s268_s28] sm:$0xff]  ;;  %s275_s6 = scalar_lea.vmem %s691_s3, %s524_s29  ;;  %v366_v21 = vsub.s32 0, %v298_v5  ;;  %v377_v22 = vsub.s32 1, %v298_v5 }
  0x11   : > { %287 = vmax.xlane.f32.xlu0 %v286_v1  ;;  %v527_v6 = vsel %vm303_vm2, 1.0, %v602_v3  ;;  %361 = vperm.xlu1 %569, %v357_v10   ;;  %v358_v23 = vld [vmem:[%s275_s6] sm:$0xf]  ;;  %v388_v24 = vsub.s32 2, %v298_v5  ;;  %v399_v32 = vsub.s32 3, %v298_v5 }
  0x12   : > { %v306_v7 = vpack.c.bf16 %v527_v6, %v527_v6  ;;  %v367_v25 = vrot.slane %v358_v23, %v366_v21  ;;  %v378_v26 = vrot.slane %v358_v23, %v377_v22 }
  0x13   : > { %v389_v29 = vrot.slane %v358_v23, %v388_v24  ;;  %v400_v37 = vrot.slane %v358_v23, %v399_v32 }
  0x14   : > { %v313_v8 = vsel %vm311_vm3, %v306_v7, 0 }
  0x15   : > { %534 = vmatpush3.bf16.msra.mxu0 %v313_v8  ;;  %570 = vset.pattern.permute.xlu1 %v606_v12 }
  0x16   : > { %372 = vperm.xlu1 %570, %v357_v10  }
  0x1a   : > { %572 = vset.pattern.permute.xlu1 %v607_v13 }
  0x1b   : > { %394 = vperm.xlu1 %572, %v357_v10  }
  0x8c   : > { %v362_v20 = vpop.permute.xlu1 %361 }
  0x8d   : > { %v368_v30 = vsub.f32 %v362_v20, %v367_v25 }
  0x8f   : > { %v369_v34 = vand.u32 2147483647, %v368_v30 }
  0x91   : > { %v373_v28 = vpop.permute.xlu1 %372 }
  0x92   : > { %v379_v31 = vsub.f32 %v373_v28, %v378_v26 }
  0x94   : > { %v380_v35 = vand.u32 2147483647, %v379_v31 }
  0x96   : > { %v395_v38 = vpop.permute.xlu1 %394  ;;  %v381_v39 = vadd.f32 %v380_v35, %v369_v34 }
  0x97   : > { %v401_v41 = vsub.f32 %v395_v38, %v400_v37 }
  0x99   : > { %v402_v43 = vand.u32 2147483647, %v401_v41 }
  0x9a   : > { %v288_v14 = vpop.xlane.xlu0 %287 }
  0x9b   : > { %v289_v15 = vsub.f32 %v284_v0, %v288_v14 }
  0x9d   : > { %v290_v16 = vmul.f32 1.442695, %v289_v15 }
  0x9f   : > { %574 = vpow2.f32 %v290_v16 }
  0xac   : > { %v575_v17 = vpop.eup %574 }
  0xad   : > { %v292_v18 = vsel %vm285_vm0, %v575_v17, 0.0  ;;  %v307_v19 = vpack.c.bf16 %v575_v17, %v575_v17 }
  0xae   : > { %293 = vadd.xlane.f32.xlu0 %v292_v18 }
  0xaf   : > { %536 = vmatmul.mubr.msk.bf16.vlgmr.msra.gmra.mxu0 %vm285_vm0, %v307_v19 }
  0xc4   : > { %383 = vperm.xlu0 %571, %v357_v10  }
  0xc8   : > { %573 = vset.pattern.permute.xlu0 %v607_v13 }
 0x137   : > { %v294_v27 = vpop.xlane.xlu0 %293 }
 0x138   : > { %576 = vrcp.f32 %v294_v27 }
 0x13f   : > { %v384_v33 = vpop.permute.xlu0 %383 }
 0x140   : > { %v390_v36 = vsub.f32 %v384_v33, %v389_v29 }
 0x142   : > { %v391_v40 = vand.u32 2147483647, %v390_v36 }
 0x144   : > { %v392_v42 = vadd.f32 %v391_v40, %v381_v39 }
 0x145   : > { %v577_v44 = vpop.eup %576 }
 0x146   : > { %v403_v48 = vadd.f32 %v402_v43, %v392_v42 }
 0x16f   : > { %v349_v45 = vpop.f32.mrf.mxu0 }
 0x170   : > { %v355_v46 = vmul.f32 %v577_v44, %v349_v45 }
 0x171   : > { %v537_v47 = vpop.f32.mrf.mxu0 }
 0x172   : > { %v356_v49 = vsub.f32 0.0, %v355_v46 }
 0x173   : > { %v352_v50 = vpop.f32.mrf.mxu0 }
 0x174   : > { %v404_v51 = vadd.f32 %v403_v48, %v356_v49 }
 0x175   : > { %v538_v52 = vpop.f32.mrf.mxu0 }
 0x176   : > { %406 = vst.msk [vmem:[%s282_s9] sm:$0xff] %vm405_vm4, %v404_v51 }
 0x177 PF: > { %s14_s17 = sadd.s32 1, %s600_s17   ;;  %s693_s15 = smov %s596_s16 }
 0x178   : > { %p11_p5 = scmp.ge.s32.totalorder %s14_s17, 4   ;;  %s694_s16 = smov %s696_s18 }
 0x17a   :  { %13 = sbr.rel (!%p11_p5) target bundleno = 2 (0x2), region = 75 }

</bundles_post_ra>
